<compile_context>
chip_gen: v5e
topology: v5e:2x2
jax: 0.10.0
libtpu: 0.0.40
codegen_flags: <defaults>
</compile_context>

<pallas_src>
import jax
import jax.numpy as jnp
from jax.experimental import pallas as pl
from jax.experimental.pallas import tpu as pltpu


def _ctc_decoder_kernel(x_ref, w_ref, b_ref, o_ref):
    # x_ref: (tm, D) bf16   w_ref: (D, Vp) bf16   b_ref: (1, Vp) f32
    # o_ref: (tm, Vp) out_dtype
    logits = jnp.dot(x_ref[...], w_ref[...],
                     preferred_element_type=jnp.float32) + b_ref[...]
    # Numerically-stable log-softmax over the (padded) vocab axis in f32.
    # Padded columns carry a ~-inf bias -> exp underflows to 0, so the real
    # columns' log-softmax is unaffected.
    m = jnp.max(logits, axis=-1, keepdims=True)
    z = logits - m
    lse = jnp.log(jnp.sum(jnp.exp(z), axis=-1, keepdims=True))
    o_ref[...] = (z - lse).astype(o_ref.dtype)


def _round_up(x, m):
    return ((x + m - 1) // m) * m


def ctc_decoder_forward(ctx, weight, bias, *, tm=256, out_dtype=jnp.float32):
    """ctx: (T, B, D); weight: (D, V); bias: (V,). Returns logps (T, B, V)."""
    T, B, D = ctx.shape
    V = weight.shape[1]
    M = T * B

    # Lane-dense vocab dim (multiple of 128).
    Vp = _round_up(V, 128)
    # Row tile: large enough to fill the MXU / amortize the ~0.35us per-step
    # overhead, but never larger than the (sublane-padded) problem.
    tm = min(tm, _round_up(M, 8))
    Mp = _round_up(M, tm)
    grid_m = Mp // tm

    # bf16 operands for the MXU (f32 master params kept outside the kernel).
    x = ctx.reshape(M, D).astype(jnp.bfloat16)
    if Mp != M:
        x = jnp.pad(x, ((0, Mp - M), (0, 0)))          # zero rows -> harmless
    w = weight.astype(jnp.bfloat16)
    b = bias.astype(jnp.float32)
    if Vp != V:
        w = jnp.pad(w, ((0, 0), (0, Vp - V)))
        # Huge negative bias on padded columns: exp(logit - max) underflows to
        # 0 so the logsumexp over the real vocabulary is exact.
        b = jnp.pad(b, (0, Vp - V), constant_values=-1e30)
    b2 = b.reshape(1, Vp)

    out_itemsize = jnp.dtype(out_dtype).itemsize

    # Explicit VMEM budget: weight/bias counted twice (Mosaic may still
    # double-buffer constant-index blocks) + double-buffered x/out tiles
    # + margin.  Keeps the config explicit for v7x's smaller 64 MiB VMEM.
    vmem_need = (2 * D * Vp * 2          # weight (bf16), x2
                 + 2 * Vp * 4            # bias (f32), x2
                 + 2 * tm * D * 2        # x tile (bf16), double-buffered
                 + 2 * tm * Vp * out_itemsize)  # out tile, double-buffered
    vmem_limit = min(max(vmem_need + (4 << 20), 16 << 20), 100 << 20)

    cost = pl.CostEstimate(
        flops=2 * Mp * D * Vp,
        transcendentals=Mp * Vp,
        bytes_accessed=Mp * D * 2 + D * Vp * 2 + Vp * 4 + Mp * Vp * out_itemsize,
    )

    logps = pl.pallas_call(
        _ctc_decoder_kernel,
        out_shape=jax.ShapeDtypeStruct((Mp, Vp), out_dtype),
        grid_spec=pltpu.PrefetchScalarGridSpec(
            num_scalar_prefetch=0,
            grid=(grid_m,),
            in_specs=[
                pl.BlockSpec((tm, D), lambda i: (i, 0)),   # row tile of ctx
                pl.BlockSpec((D, Vp), lambda i: (0, 0)),   # full (padded) weight
                pl.BlockSpec((1, Vp), lambda i: (0, 0)),   # padded bias
            ],
            out_specs=pl.BlockSpec((tm, Vp), lambda i: (i, 0)),
        ),
        compiler_params=pltpu.CompilerParams(
            dimension_semantics=("parallel",),
            vmem_limit_bytes=vmem_limit,
        ),
        cost_estimate=cost,
    )(x, w, b2)

    # Drop row / vocab padding and restore (T, B, V).
    return logps[:M, :V].reshape(T, B, V)


class CTCDecoderPallas:
    """Mirror of nmtpytorch CTCDecoder with deterministic synthetic params."""

    def __init__(self, input_size, n_vocab, ctx_name, key):
        self.input_size = input_size
        self.n_vocab = n_vocab
        self.ctx_name = ctx_name
        V = n_vocab + 1
        kw, kb = jax.random.split(key)
        # PyTorch Linear stores weight as (V, D); we keep the (D, V) transpose.
        # Master params stay f32; they are cast to bf16 for the MXU inside
        # ctc_decoder_forward.
        self.weight = (jax.random.normal(kw, (input_size, V), jnp.float32)
                       * (1.0 / jnp.sqrt(input_size)))
        self.bias = jax.random.normal(kb, (V,), jnp.float32) * 0.01

    def __call__(self, ctx_dict, y=None):
        ctx, mask = ctx_dict[self.ctx_name]
        logps = ctc_decoder_forward(ctx, self.weight, self.bias)
        # TODO(synk): warp-ctc CTC loss (variable-length DP over labels) has no
        # clean Pallas equivalent; y=None path returns loss=None.
        loss = None
        return {'loss': loss, 'logps': logps}


if __name__ == "__main__":
    key = jax.random.PRNGKey(0)
    k_ctx, k_params = jax.random.split(key)

    T, B, D = 8, 2, 32          # seq=8, batch=2, hidden=32
    n_vocab = 15                # -> V = n_vocab + 1 = 16

    ctx = jax.random.normal(k_ctx, (T, B, D), jnp.float32)
    mask = None
    decoder = CTCDecoderPallas(D, n_vocab, "speech", k_params)

    out = decoder({"speech": (ctx, mask)})
    logps = jax.block_until_ready(out["logps"])

    # sanity: log_softmax rows must sum (in prob space) to ~1
    prob_sums = jnp.exp(logps).sum(axis=-1)
    assert logps.shape == (T, B, n_vocab + 1)
    assert bool(jnp.allclose(prob_sums, 1.0, atol=1e-5))

    print("KERNEL_OK")
</pallas_src>

<mosaic_0001>
module attributes {stable_mosaic.version = 11 : i64} {
  func.func @_ctc_decoder_kernel(%arg0: i32, %arg1: memref<16x32xbf16, #tpu.memory_space<vmem>>, %arg2: memref<32x128xbf16, #tpu.memory_space<vmem>>, %arg3: memref<1x128xf32, #tpu.memory_space<vmem>>, %arg4: memref<16x128xf32, #tpu.memory_space<vmem>>) attributes {dimension_semantics = [#tpu.dimension_semantics<parallel>], iteration_bounds = array<i64: 1>, scalar_prefetch = 0 : i64, scratch_operands = 0 : i64, tpu.core_type = #tpu.core_type<tc>, window_params = [{transform_indices = @transform_0, window_bounds = array<i64: 16, 32>}, {pipeline_mode = #tpu.pipeline_mode<synchronous>, transform_indices = @transform_1, window_bounds = array<i64: 32, 128>}, {pipeline_mode = #tpu.pipeline_mode<synchronous>, transform_indices = @transform_2, window_bounds = array<i64: 1, 128>}, {transform_indices = @transform_3, window_bounds = array<i64: 16, 128>}]} {
    %c0 = arith.constant 0 : index
    %c0_0 = arith.constant 0 : index
    %0 = vector.load %arg1[%c0, %c0_0] : memref<16x32xbf16, #tpu.memory_space<vmem>>, vector<16x32xbf16>
    %c0_1 = arith.constant 0 : index
    %c0_2 = arith.constant 0 : index
    %1 = vector.load %arg2[%c0_1, %c0_2] : memref<32x128xbf16, #tpu.memory_space<vmem>>, vector<32x128xbf16>
    %cst = arith.constant dense<0.000000e+00> : vector<16x128xf32>
    %2 = tpu.matmul %0, %1, %cst {dimension_numbers = #tpu.dot_dimension_numbers<[1], [0], [0], [1], [0, 0, 1, 1], [], []>} : vector<16x32xbf16>, vector<32x128xbf16>, vector<16x128xf32> -> vector<16x128xf32>
    %c0_3 = arith.constant 0 : index
    %c0_4 = arith.constant 0 : index
    %3 = vector.load %arg3[%c0_3, %c0_4] : memref<1x128xf32, #tpu.memory_space<vmem>>, vector<1x128xf32>
    %4 = vector.broadcast %3 : vector<1x128xf32> to vector<16x128xf32>
    %5 = arith.addf %2, %4 : vector<16x128xf32>
    %cst_5 = arith.constant dense<0xFF800000> : vector<16xf32>
    %6 = vector.multi_reduction <maximumf>, %5, %cst_5 [1] : vector<16x128xf32> to vector<16xf32>
    %7 = vector.shape_cast %6 : vector<16xf32> to vector<16x1xf32>
    %8 = vector.broadcast %7 : vector<16x1xf32> to vector<16x128xf32>
    %9 = arith.subf %5, %8 : vector<16x128xf32>
    %10 = math.exp %9 : vector<16x128xf32>
    %cst_6 = arith.constant dense<0.000000e+00> : vector<16xf32>
    %11 = vector.multi_reduction <add>, %10, %cst_6 [1] : vector<16x128xf32> to vector<16xf32>
    %12 = vector.shape_cast %11 : vector<16xf32> to vector<16x1xf32>
    %13 = math.log %12 : vector<16x1xf32>
    %14 = vector.broadcast %13 : vector<16x1xf32> to vector<16x128xf32>
    %15 = arith.subf %9, %14 : vector<16x128xf32>
    %c0_7 = arith.constant 0 : index
    %c0_8 = arith.constant 0 : index
    %16 = vector.load %arg4[%c0_7, %c0_8] : memref<16x128xf32, #tpu.memory_space<vmem>>, vector<16x128xf32>
    tpu.vector_store %arg4[%c0_7, %c0_8], %15 {strides = array<i32>} : memref<16x128xf32, #tpu.memory_space<vmem>>, vector<16x128xf32>,
    return
  }
  func.func @transform_0(%arg0: i32) -> (i32, i32) {
    %c0_i32 = arith.constant 0 : i32
    %c0_i32_0 = arith.constant 0 : i32
    return %arg0, %c0_i32 : i32, i32
  }
  func.func @transform_1(%arg0: i32) -> (i32, i32) {
    %c0_i32 = arith.constant 0 : i32
    %c0_i32_0 = arith.constant 0 : i32
    %c0_i32_1 = arith.constant 0 : i32
    return %c0_i32, %c0_i32_0 : i32, i32
  }
  func.func @transform_2(%arg0: i32) -> (i32, i32) {
    %c0_i32 = arith.constant 0 : i32
    %c0_i32_0 = arith.constant 0 : i32
    %c0_i32_1 = arith.constant 0 : i32
    return %c0_i32, %c0_i32_0 : i32, i32
  }
  func.func @transform_3(%arg0: i32) -> (i32, i32) {
    %c0_i32 = arith.constant 0 : i32
    %c0_i32_0 = arith.constant 0 : i32
    return %arg0, %c0_i32 : i32, i32
  }
}

</mosaic_0001>

<bundles_post_ra>
// kernel: tpu_custom_call.1
= control target key start
LH: loop header
LB: loop body
LE: loop exit
PB: predicated region body
PF: predicated region fallthrough
CT: control target
= control target key end

     0   :  { %8 = vsyncpa [#allocation3], 0  ;;  %s284_s0 = inlined_call_operand.hbm [shape: bf16[16,32], index: 0, kind: input, shape index: {}]   ;;  %s285_s1 = inlined_call_operand.hbm [shape: bf16[32,128], index: 1, kind: input, shape index: {}]   ;;  %s286_s2 = inlined_call_operand.vmem [shape: f32[1,128], index: 2, kind: input, shape index: {}]   ;;  %s287_s3 = inlined_call_operand.hbm [shape: f32[16,128], index: 3, kind: output, shape index: {}]  }
   0x1   :  { %9 = vsyncpa [#allocation6], 0 }
   0x2   :  { %10 = vsyncpa [#allocation4], 0  ;;  %s15_s14 = sshll.u32 %s284_s0, 4  ;;  %s245_s15 = smov [#allocation2]   ;;  %s16_s14 = int_to_ptr.hbm [resolvable:$true] %s15_s14 }
   0x3   :  { %s17_s16 = sshll.u32 %s245_s15, 4  ;;  %s28_s19 = sshll.u32 %s285_s1, 4  ;;  %s18_s16 = int_to_ptr.vmem [resolvable:$true] %s17_s16  ;;  %s29_s19 = int_to_ptr.hbm [resolvable:$true] %s28_s19 }
   0x4   :  { %s246_s20 = smov 64   ;;  %s247_s21 = smov 4  }
   0x5   :  { %23 = dma.hbm_to_vmem [thread:$0]  %s16_s14, 128, %s18_s16, [#allocation3], %s246_s20, %s246_s20, %s247_s21  }
   0x6   :  { %s248_s22 = smov [#allocation5]  }
   0x7   :  { %s30_s23 = sshll.u32 %s248_s22, 4  ;;  %s31_s23 = int_to_ptr.vmem [resolvable:$true] %s30_s23 }
   0x8   :  { %36 = dma.hbm_to_vmem [thread:$0]  %s29_s19, 256, %s31_s23, [#allocation6], %s246_s20, %s246_s20, %s247_s21  }
   0x9   :  { %239 = dma.done.wait [#allocation3], 128  }
   0xa   :  { %240 = vsyncadd [#allocation3], 4294967168 }
   0xb   :  { %241 = dma.done.wait [#allocation6], 256  }
   0xc   :  { %242 = vsyncadd [#allocation6], 4294967040  ;;  %v150_v0 = vld [vmem:[#allocation5 + $0x8] sm:$0xff]  ;;  %v149_v1 = vld [vmem:[#allocation5] sm:$0xff]  ;;  %vm75_vm0 = vcmask 261120   ;;  %s121_s27 = sshll.u32 %s287_s3, 4  ;;  %s122_s27 = int_to_ptr.hbm [resolvable:$true] %s121_s27 }
   0xd   :  { %85 = vmatpush.bf16.msra.mxu0 %v150_v0  ;;  %v148_v2 = vld [vmem:[#allocation2] sm:$0xff]  ;;  %s250_s28 = smov 128   ;;  %s251_s29 = smov 8  }
   0xe   :  { %v158_v3 = vld [vmem:[%s286_s2] ss:$0 sm:$0xff]  ;;  %s249_s2 = smov [#allocation7]  }
   0xf   :  { %s119_s24 = sshll.u32 %s249_s2, 4  ;;  %s120_s24 = int_to_ptr.vmem [resolvable:$true] %s119_s24 }
  0x11   :  { %86 = vmatpush.bf16.msra.mxu0 %v149_v1 }
  0x14   :  { %147 = vmatmul.msk.bf16.vlgmr.msra.gmra.mxu0 %vm75_vm0, %v148_v2 }
  0x91   :  { %v88_v4 = vpop.f32.mrf.mxu0 }
  0x92   :  { %v89_v5 = vadd.f32 %v158_v3, %v88_v4 }
  0x94   :  { %93 = vmax.xlane.f32.xlu0 %v89_v5 }
  0x99   :  { %v90_v6 = vpop.f32.mrf.mxu0 }
  0x9a   :  { %v91_v7 = vadd.f32 %v158_v3, %v90_v6 }
  0x9c   :  { %95 = vmax.xlane.f32.xlu0 %v91_v7 }
 0x107   :  { %v94_v8 = vpop.xlane.xlu0 %93 }
 0x108   :  { %v97_v9 = vsub.f32 %v89_v5, %v94_v8 }
 0x10a   :  { %v99_v10 = vmul.f32 1.442695, %v97_v9 }
 0x10c   :  { %159 = vpow2.f32 %v99_v10 }
 0x10f   :  { %v96_v11 = vpop.xlane.xlu0 %95 }
 0x110   :  { %v98_v12 = vsub.f32 %v91_v7, %v96_v11 }
 0x112   :  { %v160_v13 = vpop.eup %159  ;;  %v101_v14 = vmul.f32 1.442695, %v98_v12 }
 0x113   :  { %103 = vadd.xlane.f32.xlu1 %v160_v13 }
 0x114   :  { %161 = vpow2.f32 %v101_v14 }
 0x11a   :  { %v162_v15 = vpop.eup %161 }
 0x11b   :  { %105 = vadd.xlane.f32.xlu1 %v162_v15 }
 0x186   :  { %v104_v16 = vpop.xlane.xlu1 %103 }
 0x187   :  { %163 = vlog2.f32 %v104_v16 }
 0x18d   :  { %v164_v17 = vpop.eup %163 }
 0x18e   :  { %v108_v18 = vmul.f32 0.6931472, %v164_v17  ;;  %v106_v19 = vpop.xlane.xlu1 %105 }
 0x18f   :  { %165 = vlog2.f32 %v106_v19 }
 0x190   :  { %v111_v20 = vsub.f32 %v97_v9, %v108_v18 }
 0x192   :  { %113 = vst [vmem:[#allocation7] sm:$0xff] %v111_v20 }
 0x195   :  { %v166_v21 = vpop.eup %165 }
 0x196   :  { %v110_v22 = vmul.f32 0.6931472, %v166_v21 }
 0x198   :  { %v112_v23 = vsub.f32 %v98_v12, %v110_v22 }
 0x19a   :  { %114 = vst [vmem:[#allocation7 + $0x8] sm:$0xff] %v112_v23 }
 0x19b   :  { %127 = dma.vmem_to_hbm [thread:$0]  %s120_s24, 256, %s122_s27, [#allocation4], %s250_s28, %s250_s28, %s251_s29  }
 0x19c   :  { %243 = dma.done.wait [#allocation4], 256  }
 0x19d   :  { %244 = vsyncadd [#allocation4], 4294967040 }
 0x19e   :  { %132 = vsyncpa [#allocation3], 1 }
 0x19f   :  { %133 = vsyncpa [#allocation6], 1 }
 0x1a0   :  { %134 = vsyncpa [#allocation4], 1 }

</bundles_post_ra>
